<compile_context>
chip_gen: v7x
topology: tpu7x:2x2x1
jax: 0.10.0
libtpu: 0.0.40
codegen_flags: <defaults>
</compile_context>

<pallas_src>
import jax
import jax.numpy as jnp
from jax.experimental import pallas as pl
from jax.experimental.pallas import tpu as pltpu


def decoder_kernel(tok_ref,                        # SMEM (T, B) int32 (scalar prefetch)
                   state_in_ref,                   # VMEM (B, 4H) packed [h0|h1|c0|c1]
                   emb_hbm,                        # HBM/ANY (VOCAB, E)
                   w_ih0_ref, w_hh0_ref, b0_ref,   # layer 0 weights (E,4H),(H,4H),(1,4H)
                   w_ih1_ref, w_hh1_ref, b1_ref,   # layer 1 weights (H,4H),(H,4H),(1,4H)
                   w_fc_ref, b_fc_ref,             # output projection (H,V),(1,V)
                   pred_ref,                       # VMEM (1, B, V) per-step block
                   state_out_ref,                  # VMEM (B, 4H) resident across steps
                   x_buf, dma_sem):                # scratch: (B,E) gather buffer, (B,) sems
    t = pl.program_id(0)
    B, E = x_buf.shape
    H = state_out_ref.shape[1] // 4

    # ---- embedding gather: B per-row DMAs from HBM driven by SMEM token ids ----
    for b in range(B):
        idx = tok_ref[t, b]
        pltpu.make_async_copy(emb_hbm.at[pl.ds(idx, 1), :],
                              x_buf.at[pl.ds(b, 1), :],
                              dma_sem.at[b]).start()

    # ---- state lives in the resident output block; seed it from state_in at step 0 ----
    @pl.when(t == 0)
    def _():
        state_out_ref[...] = state_in_ref[...]

    state = state_out_ref[...]                       # (B, 4H) = (8, 128)
    h_l0 = state[:, 0 * H:1 * H]
    h_l1 = state[:, 1 * H:2 * H]
    c_l0 = state[:, 2 * H:3 * H]
    c_l1 = state[:, 3 * H:4 * H]

    # single-EUP-pass activation: sigmoid(x) = 0.5*(tanh(x/2)+1); the g lanes keep plain tanh
    col = jax.lax.broadcasted_iota(jnp.int32, (1, 4 * H), 1)
    is_g = jnp.logical_and(col >= 2 * H, col < 3 * H)
    pre = jnp.where(is_g, jnp.float32(1.0), jnp.float32(0.5))

    def lstm_cell(inp, h_prev, c_prev, w_ih, w_hh, b):
        gates = (jnp.dot(inp, w_ih, preferred_element_type=jnp.float32)
                 + jnp.dot(h_prev, w_hh, preferred_element_type=jnp.float32)
                 + b)                                # (B, 4H), PyTorch gate order i,f,g,o
        th = jnp.tanh(gates * pre)                   # ONE tanh over the full (B, 4H) vreg
        act = jnp.where(is_g, th, 0.5 * th + 0.5)    # i/f/o lanes become sigmoid(gate)
        i = act[:, 0 * H:1 * H]
        f = act[:, 1 * H:2 * H]
        g = act[:, 2 * H:3 * H]
        o = act[:, 3 * H:4 * H]
        c_new = f * c_prev + i * g
        h_new = o * jnp.tanh(c_new)
        return h_new, c_new

    # wait for the embedding gather (issued first so it overlaps the state unpack above)
    for b in range(B):
        pltpu.make_async_copy(emb_hbm.at[pl.ds(0, 1), :],
                              x_buf.at[pl.ds(b, 1), :],
                              dma_sem.at[b]).wait()
    x = x_buf[...]                                   # (B, E)

    h1, c1 = lstm_cell(x, h_l0, c_l0, w_ih0_ref[...], w_hh0_ref[...], b0_ref[...])
    # TODO(synk): nn.LSTM inter-layer dropout(p) is identity in eval mode (implemented so).
    h2, c2 = lstm_cell(h1, h_l1, c_l1, w_ih1_ref[...], w_hh1_ref[...], b1_ref[...])

    # packed state stays lane-dense in the resident VMEM block (HBM writeback once at end)
    state_out_ref[:, 0 * H:1 * H] = h1
    state_out_ref[:, 1 * H:2 * H] = h2
    state_out_ref[:, 2 * H:3 * H] = c1
    state_out_ref[:, 3 * H:4 * H] = c2

    # vocab projection: lane-dense (B, V) per-step store
    pred_ref[0, :, :] = (jnp.dot(h2, w_fc_ref[...], preferred_element_type=jnp.float32)
                         + b_fc_ref[...])


def decoder_decode(tokens, hidden, cell, emb_table, params):
    """T teacher-forced decode steps in one kernel.

    tokens: (T, B) int32; hidden/cell: (L=2, B, H).
    Returns (pred (T, B, V), hidden (L, B, H), cell (L, B, H)).
    """
    T, B = tokens.shape
    L, _, H = hidden.shape
    VOCAB, E = emb_table.shape
    V = params["w_fc"].shape[1]

    # pack state once per decode call (not per step): (B, 4H) = [h_l0 | h_l1 | c_l0 | c_l1]
    state_in = jnp.concatenate([hidden[0], hidden[1], cell[0], cell[1]], axis=-1)

    def const(shape):
        return pl.BlockSpec(shape, lambda t, tok, _s=len(shape): (0,) * _s)

    flops = T * 2 * B * ((E + H) * 4 * H + 2 * H * 4 * H + H * V)
    transcendentals = T * 2 * B * (4 * H + H)
    bytes_accessed = (4 * ((E + H) * 4 * H + 2 * H * 4 * H + 2 * 4 * H + H * V + V
                           + 2 * B * 4 * H)
                      + T * (4 * B * E + 4 * B * V + 4 * B))

    grid_spec = pltpu.PrefetchScalarGridSpec(
        num_scalar_prefetch=1,
        grid=(T,),
        in_specs=[
            const((B, 4 * H)),                         # packed state_in
            pl.BlockSpec(memory_space=pl.ANY),         # embedding table stays in HBM
            const((E, 4 * H)), const((H, 4 * H)), const((1, 4 * H)),   # layer 0
            const((H, 4 * H)), const((H, 4 * H)), const((1, 4 * H)),   # layer 1
            const((H, V)), const((1, V)),                              # fc
        ],
        out_specs=(
            pl.BlockSpec((1, B, V), lambda t, tok: (t, 0, 0)),   # per-step logits
            const((B, 4 * H)),                                    # final packed state
        ),
        scratch_shapes=[
            pltpu.VMEM((B, E), jnp.float32),       # gathered embedding rows
            pltpu.SemaphoreType.DMA((B,)),         # one DMA sem per gathered row
        ],
    )

    pred_all, state_out = pl.pallas_call(
        decoder_kernel,
        out_shape=(
            jax.ShapeDtypeStruct((T, B, V), jnp.float32),
            jax.ShapeDtypeStruct((B, 4 * H), jnp.float32),
        ),
        grid_spec=grid_spec,
        compiler_params=pltpu.CompilerParams(
            dimension_semantics=("arbitrary",),          # state carried step -> step
            vmem_limit_bytes=32 * 1024 * 1024,           # explicit (v5e default is 16 MiB)
        ),
        cost_estimate=pl.CostEstimate(flops=flops,
                                      transcendentals=transcendentals,
                                      bytes_accessed=bytes_accessed),
    )(tokens.astype(jnp.int32), state_in, emb_table,
      params["w_ih0"], params["w_hh0"], params["b0"],
      params["w_ih1"], params["w_hh1"], params["b1"],
      params["w_fc"], params["b_fc"])

    # unpack state once per decode call
    h_out = jnp.stack([state_out[:, 0 * H:1 * H], state_out[:, 1 * H:2 * H]])
    c_out = jnp.stack([state_out[:, 2 * H:3 * H], state_out[:, 3 * H:4 * H]])
    return pred_all, h_out, c_out


def decoder_forward(tokens, hidden, cell, emb_table, params):
    """Single decode step — matches the PyTorch module's forward(x, hidden, cell)."""
    pred_all, h_out, c_out = decoder_decode(tokens[None, :], hidden, cell, emb_table, params)
    return pred_all[0], h_out, c_out


def reference_step(tokens, hidden, cell, emb_table, p):
    """Pure-JAX reference matching PyTorch LSTM (gate order i,f,g,o) + Linear."""
    H = hidden.shape[-1]
    x = emb_table[tokens]                              # (B, E)

    def cell_fn(inp, h, c, w_ih, w_hh, b):
        g = inp @ w_ih + h @ w_hh + b
        i = jax.nn.sigmoid(g[:, 0 * H:1 * H])
        f = jax.nn.sigmoid(g[:, 1 * H:2 * H])
        gg = jnp.tanh(g[:, 2 * H:3 * H])
        o = jax.nn.sigmoid(g[:, 3 * H:4 * H])
        cn = f * c + i * gg
        return o * jnp.tanh(cn), cn

    h1, c1 = cell_fn(x, hidden[0], cell[0], p["w_ih0"], p["w_hh0"], p["b0"])
    h2, c2 = cell_fn(h1, hidden[1], cell[1], p["w_ih1"], p["w_hh1"], p["b1"])
    pred = h2 @ p["w_fc"] + p["b_fc"]
    return pred, jnp.stack([h1, h2]), jnp.stack([c1, c2])


if __name__ == "__main__":
    # Small shapes consistent with Decoder(input_size, embedding_size, hidden_size,
    # output_size, num_layers=2, p): one decode step has seq_len 1; T steps are looped
    # inside the kernel via grid=(T,).
    B, E, H, V, L, T = 8, 32, 32, 128, 2, 6
    VOCAB = 128  # embedding table standing in for the pretrained `embeddings` dict

    key = jax.random.PRNGKey(0)
    keys = jax.random.split(key, 16)
    scale = 1.0 / jnp.sqrt(jnp.float32(H))

    emb_table = jax.random.normal(keys[0], (VOCAB, E), dtype=jnp.float32)
    tokens = jax.random.randint(keys[1], (T, B), 0, VOCAB, dtype=jnp.int32)

    params = {
        # layer 0: input size E (weights pre-transposed to (in, 4H), gate order i,f,g,o;
        # biases pre-summed b_ih+b_hh — enforce this when importing real PyTorch weights)
        "w_ih0": scale * jax.random.normal(keys[2], (E, 4 * H), dtype=jnp.float32),
        "w_hh0": scale * jax.random.normal(keys[3], (H, 4 * H), dtype=jnp.float32),
        "b0":    scale * jax.random.normal(keys[4], (1, 4 * H), dtype=jnp.float32),
        # layer 1: input size H
        "w_ih1": scale * jax.random.normal(keys[5], (H, 4 * H), dtype=jnp.float32),
        "w_hh1": scale * jax.random.normal(keys[6], (H, 4 * H), dtype=jnp.float32),
        "b1":    scale * jax.random.normal(keys[7], (1, 4 * H), dtype=jnp.float32),
        # fc: hidden -> vocab logits
        "w_fc":  scale * jax.random.normal(keys[8], (H, V), dtype=jnp.float32),
        "b_fc":  scale * jax.random.normal(keys[9], (1, V), dtype=jnp.float32),
    }

    hidden = jax.random.normal(keys[10], (L, B, H), dtype=jnp.float32)
    cell = jax.random.normal(keys[11], (L, B, H), dtype=jnp.float32)

    # --- full T-step decode in one kernel ---
    decode = jax.jit(decoder_decode)
    pred_all, h_out, c_out = jax.block_until_ready(
        decode(tokens, hidden, cell, emb_table, params))

    # reference: T single steps chained
    preds_r = []
    h_r, c_r = hidden, cell
    for t in range(T):
        p_r, h_r, c_r = reference_step(tokens[t], h_r, c_r, emb_table, params)
        preds_r.append(p_r)
    pred_r = jnp.stack(preds_r)

    assert pred_all.shape == (T, B, V)
    assert h_out.shape == (L, B, H) and c_out.shape == (L, B, H)
    assert jnp.allclose(pred_all, pred_r, atol=1e-4, rtol=1e-4)
    assert jnp.allclose(h_out, h_r, atol=1e-4, rtol=1e-4)
    assert jnp.allclose(c_out, c_r, atol=1e-4, rtol=1e-4)

    # --- single-step forward (the module's exact forward API) ---
    step = jax.jit(decoder_forward)
    p1, h1, c1 = jax.block_until_ready(
        step(tokens[0], hidden, cell, emb_table, params))
    p1_r, h1_r, c1_r = reference_step(tokens[0], hidden, cell, emb_table, params)
    assert p1.shape == (B, V)
    assert jnp.allclose(p1, p1_r, atol=1e-4, rtol=1e-4)
    assert jnp.allclose(h1, h1_r, atol=1e-4, rtol=1e-4)
    assert jnp.allclose(c1, c1_r, atol=1e-4, rtol=1e-4)

    print("KERNEL_OK")
</pallas_src>

<mosaic_0001>
module attributes {stable_mosaic.version = 11 : i64} {
  func.func @decoder_kernel(%arg0: i32, %arg1: memref<6x8xi32, #tpu.memory_space<smem>>, %arg2: memref<8x128xf32, #tpu.memory_space<vmem>>, %arg3: memref<128x32xf32, #tpu.memory_space<any>>, %arg4: memref<32x128xf32, #tpu.memory_space<vmem>>, %arg5: memref<32x128xf32, #tpu.memory_space<vmem>>, %arg6: memref<1x128xf32, #tpu.memory_space<vmem>>, %arg7: memref<32x128xf32, #tpu.memory_space<vmem>>, %arg8: memref<32x128xf32, #tpu.memory_space<vmem>>, %arg9: memref<1x128xf32, #tpu.memory_space<vmem>>, %arg10: memref<32x128xf32, #tpu.memory_space<vmem>>, %arg11: memref<1x128xf32, #tpu.memory_space<vmem>>, %arg12: memref<1x8x128xf32, #tpu.memory_space<vmem>>, %arg13: memref<8x128xf32, #tpu.memory_space<vmem>>, %arg14: memref<8x32xf32, #tpu.memory_space<vmem>>, %arg15: memref<8x!tpu.dma_semaphore, #tpu.memory_space<semaphore_mem>>) attributes {dimension_semantics = [#tpu.dimension_semantics<arbitrary>], iteration_bounds = array<i64: 6>, scalar_prefetch = 1 : i64, scratch_operands = 2 : i64, tpu.core_type = #tpu.core_type<tc>, window_params = [{pipeline_mode = #tpu.pipeline_mode<synchronous>, transform_indices = @transform_0, window_bounds = array<i64: 8, 128>}, {}, {pipeline_mode = #tpu.pipeline_mode<synchronous>, transform_indices = @transform_2, window_bounds = array<i64: 32, 128>}, {pipeline_mode = #tpu.pipeline_mode<synchronous>, transform_indices = @transform_3, window_bounds = array<i64: 32, 128>}, {pipeline_mode = #tpu.pipeline_mode<synchronous>, transform_indices = @transform_4, window_bounds = array<i64: 1, 128>}, {pipeline_mode = #tpu.pipeline_mode<synchronous>, transform_indices = @transform_5, window_bounds = array<i64: 32, 128>}, {pipeline_mode = #tpu.pipeline_mode<synchronous>, transform_indices = @transform_6, window_bounds = array<i64: 32, 128>}, {pipeline_mode = #tpu.pipeline_mode<synchronous>, transform_indices = @transform_7, window_bounds = array<i64: 1, 128>}, {pipeline_mode = #tpu.pipeline_mode<synchronous>, transform_indices = @transform_8, window_bounds = array<i64: 32, 128>}, {pipeline_mode = #tpu.pipeline_mode<synchronous>, transform_indices = @transform_9, window_bounds = array<i64: 1, 128>}, {transform_indices = @transform_10, window_bounds = array<i64: 1, 8, 128>}, {pipeline_mode = #tpu.pipeline_mode<synchronous>, transform_indices = @transform_11, window_bounds = array<i64: 8, 128>}]} {
    %0 = arith.index_cast %arg0 : i32 to index
    %c0 = arith.constant 0 : index
    %1 = memref.load %arg1[%0, %c0] : memref<6x8xi32, #tpu.memory_space<smem>>
    %c0_i32 = arith.constant 0 : i32
    %c0_i32_0 = arith.constant 0 : i32
    %2 = tpu.memref_slice %arg3[%1, %c0_i32_0] : memref<128x32xf32, #tpu.memory_space<any>> -> memref<1x32xf32, #tpu.memory_space<any>>
    %c0_i32_1 = arith.constant 0 : i32
    %c0_i32_2 = arith.constant 0 : i32
    %3 = tpu.memref_slice %arg14[%c0_i32_1, %c0_i32_2] : memref<8x32xf32, #tpu.memory_space<vmem>> -> memref<1x32xf32, #tpu.memory_space<vmem>>
    %4 = tpu.memref_slice %arg15[%c0_i32] : memref<8x!tpu.dma_semaphore, #tpu.memory_space<semaphore_mem>> -> memref<1x!tpu.dma_semaphore, #tpu.memory_space<semaphore_mem>>
    %5 = tpu.memref_squeeze %4 : memref<1x!tpu.dma_semaphore, #tpu.memory_space<semaphore_mem>> -> memref<!tpu.dma_semaphore, #tpu.memory_space<semaphore_mem>>
    tpu.enqueue_dma source(%2 : memref<1x32xf32, #tpu.memory_space<any>>) target(%3 : memref<1x32xf32, #tpu.memory_space<vmem>>) target_semaphore(%5 : memref<!tpu.dma_semaphore, #tpu.memory_space<semaphore_mem>>)
    %6 = arith.index_cast %arg0 : i32 to index
    %c1 = arith.constant 1 : index
    %7 = memref.load %arg1[%6, %c1] : memref<6x8xi32, #tpu.memory_space<smem>>
    %c1_i32 = arith.constant 1 : i32
    %c0_i32_3 = arith.constant 0 : i32
    %8 = tpu.memref_slice %arg3[%7, %c0_i32_3] : memref<128x32xf32, #tpu.memory_space<any>> -> memref<1x32xf32, #tpu.memory_space<any>>
    %c1_i32_4 = arith.constant 1 : i32
    %c0_i32_5 = arith.constant 0 : i32
    %9 = tpu.memref_slice %arg14[%c1_i32_4, %c0_i32_5] : memref<8x32xf32, #tpu.memory_space<vmem>> -> memref<1x32xf32, #tpu.memory_space<vmem>>
    %10 = tpu.memref_slice %arg15[%c1_i32] : memref<8x!tpu.dma_semaphore, #tpu.memory_space<semaphore_mem>> -> memref<1x!tpu.dma_semaphore, #tpu.memory_space<semaphore_mem>>
    %11 = tpu.memref_squeeze %10 : memref<1x!tpu.dma_semaphore, #tpu.memory_space<semaphore_mem>> -> memref<!tpu.dma_semaphore, #tpu.memory_space<semaphore_mem>>
    tpu.enqueue_dma source(%8 : memref<1x32xf32, #tpu.memory_space<any>>) target(%9 : memref<1x32xf32, #tpu.memory_space<vmem>>) target_semaphore(%11 : memref<!tpu.dma_semaphore, #tpu.memory_space<semaphore_mem>>)
    %12 = arith.index_cast %arg0 : i32 to index
    %c2 = arith.constant 2 : index
    %13 = memref.load %arg1[%12, %c2] : memref<6x8xi32, #tpu.memory_space<smem>>
    %c2_i32 = arith.constant 2 : i32
    %c0_i32_6 = arith.constant 0 : i32
    %14 = tpu.memref_slice %arg3[%13, %c0_i32_6] : memref<128x32xf32, #tpu.memory_space<any>> -> memref<1x32xf32, #tpu.memory_space<any>>
    %c2_i32_7 = arith.constant 2 : i32
    %c0_i32_8 = arith.constant 0 : i32
    %15 = tpu.memref_slice %arg14[%c2_i32_7, %c0_i32_8] : memref<8x32xf32, #tpu.memory_space<vmem>> -> memref<1x32xf32, #tpu.memory_space<vmem>>
    %16 = tpu.memref_slice %arg15[%c2_i32] : memref<8x!tpu.dma_semaphore, #tpu.memory_space<semaphore_mem>> -> memref<1x!tpu.dma_semaphore, #tpu.memory_space<semaphore_mem>>
    %17 = tpu.memref_squeeze %16 : memref<1x!tpu.dma_semaphore, #tpu.memory_space<semaphore_mem>> -> memref<!tpu.dma_semaphore, #tpu.memory_space<semaphore_mem>>
    tpu.enqueue_dma source(%14 : memref<1x32xf32, #tpu.memory_space<any>>) target(%15 : memref<1x32xf32, #tpu.memory_space<vmem>>) target_semaphore(%17 : memref<!tpu.dma_semaphore, #tpu.memory_space<semaphore_mem>>)
    %18 = arith.index_cast %arg0 : i32 to index
    %c3 = arith.constant 3 : index
    %19 = memref.load %arg1[%18, %c3] : memref<6x8xi32, #tpu.memory_space<smem>>
    %c3_i32 = arith.constant 3 : i32
    %c0_i32_9 = arith.constant 0 : i32
    %20 = tpu.memref_slice %arg3[%19, %c0_i32_9] : memref<128x32xf32, #tpu.memory_space<any>> -> memref<1x32xf32, #tpu.memory_space<any>>
    %c3_i32_10 = arith.constant 3 : i32
    %c0_i32_11 = arith.constant 0 : i32
    %21 = tpu.memref_slice %arg14[%c3_i32_10, %c0_i32_11] : memref<8x32xf32, #tpu.memory_space<vmem>> -> memref<1x32xf32, #tpu.memory_space<vmem>>
    %22 = tpu.memref_slice %arg15[%c3_i32] : memref<8x!tpu.dma_semaphore, #tpu.memory_space<semaphore_mem>> -> memref<1x!tpu.dma_semaphore, #tpu.memory_space<semaphore_mem>>
    %23 = tpu.memref_squeeze %22 : memref<1x!tpu.dma_semaphore, #tpu.memory_space<semaphore_mem>> -> memref<!tpu.dma_semaphore, #tpu.memory_space<semaphore_mem>>
    tpu.enqueue_dma source(%20 : memref<1x32xf32, #tpu.memory_space<any>>) target(%21 : memref<1x32xf32, #tpu.memory_space<vmem>>) target_semaphore(%23 : memref<!tpu.dma_semaphore, #tpu.memory_space<semaphore_mem>>)
    %24 = arith.index_cast %arg0 : i32 to index
    %c4 = arith.constant 4 : index
    %25 = memref.load %arg1[%24, %c4] : memref<6x8xi32, #tpu.memory_space<smem>>
    %c4_i32 = arith.constant 4 : i32
    %c0_i32_12 = arith.constant 0 : i32
    %26 = tpu.memref_slice %arg3[%25, %c0_i32_12] : memref<128x32xf32, #tpu.memory_space<any>> -> memref<1x32xf32, #tpu.memory_space<any>>
    %c4_i32_13 = arith.constant 4 : i32
    %c0_i32_14 = arith.constant 0 : i32
    %27 = tpu.memref_slice %arg14[%c4_i32_13, %c0_i32_14] : memref<8x32xf32, #tpu.memory_space<vmem>> -> memref<1x32xf32, #tpu.memory_space<vmem>>
    %28 = tpu.memref_slice %arg15[%c4_i32] : memref<8x!tpu.dma_semaphore, #tpu.memory_space<semaphore_mem>> -> memref<1x!tpu.dma_semaphore, #tpu.memory_space<semaphore_mem>>
    %29 = tpu.memref_squeeze %28 : memref<1x!tpu.dma_semaphore, #tpu.memory_space<semaphore_mem>> -> memref<!tpu.dma_semaphore, #tpu.memory_space<semaphore_mem>>
    tpu.enqueue_dma source(%26 : memref<1x32xf32, #tpu.memory_space<any>>) target(%27 : memref<1x32xf32, #tpu.memory_space<vmem>>) target_semaphore(%29 : memref<!tpu.dma_semaphore, #tpu.memory_space<semaphore_mem>>)
    %30 = arith.index_cast %arg0 : i32 to index
    %c5 = arith.constant 5 : index
    %31 = memref.load %arg1[%30, %c5] : memref<6x8xi32, #tpu.memory_space<smem>>
    %c5_i32 = arith.constant 5 : i32
    %c0_i32_15 = arith.constant 0 : i32
    %32 = tpu.memref_slice %arg3[%31, %c0_i32_15] : memref<128x32xf32, #tpu.memory_space<any>> -> memref<1x32xf32, #tpu.memory_space<any>>
    %c5_i32_16 = arith.constant 5 : i32
    %c0_i32_17 = arith.constant 0 : i32
    %33 = tpu.memref_slice %arg14[%c5_i32_16, %c0_i32_17] : memref<8x32xf32, #tpu.memory_space<vmem>> -> memref<1x32xf32, #tpu.memory_space<vmem>>
    %34 = tpu.memref_slice %arg15[%c5_i32] : memref<8x!tpu.dma_semaphore, #tpu.memory_space<semaphore_mem>> -> memref<1x!tpu.dma_semaphore, #tpu.memory_space<semaphore_mem>>
    %35 = tpu.memref_squeeze %34 : memref<1x!tpu.dma_semaphore, #tpu.memory_space<semaphore_mem>> -> memref<!tpu.dma_semaphore, #tpu.memory_space<semaphore_mem>>
    tpu.enqueue_dma source(%32 : memref<1x32xf32, #tpu.memory_space<any>>) target(%33 : memref<1x32xf32, #tpu.memory_space<vmem>>) target_semaphore(%35 : memref<!tpu.dma_semaphore, #tpu.memory_space<semaphore_mem>>)
    %36 = arith.index_cast %arg0 : i32 to index
    %c6 = arith.constant 6 : index
    %37 = memref.load %arg1[%36, %c6] : memref<6x8xi32, #tpu.memory_space<smem>>
    %c6_i32 = arith.constant 6 : i32
    %c0_i32_18 = arith.constant 0 : i32
    %38 = tpu.memref_slice %arg3[%37, %c0_i32_18] : memref<128x32xf32, #tpu.memory_space<any>> -> memref<1x32xf32, #tpu.memory_space<any>>
    %c6_i32_19 = arith.constant 6 : i32
    %c0_i32_20 = arith.constant 0 : i32
    %39 = tpu.memref_slice %arg14[%c6_i32_19, %c0_i32_20] : memref<8x32xf32, #tpu.memory_space<vmem>> -> memref<1x32xf32, #tpu.memory_space<vmem>>
    %40 = tpu.memref_slice %arg15[%c6_i32] : memref<8x!tpu.dma_semaphore, #tpu.memory_space<semaphore_mem>> -> memref<1x!tpu.dma_semaphore, #tpu.memory_space<semaphore_mem>>
    %41 = tpu.memref_squeeze %40 : memref<1x!tpu.dma_semaphore, #tpu.memory_space<semaphore_mem>> -> memref<!tpu.dma_semaphore, #tpu.memory_space<semaphore_mem>>
    tpu.enqueue_dma source(%38 : memref<1x32xf32, #tpu.memory_space<any>>) target(%39 : memref<1x32xf32, #tpu.memory_space<vmem>>) target_semaphore(%41 : memref<!tpu.dma_semaphore, #tpu.memory_space<semaphore_mem>>)
    %42 = arith.index_cast %arg0 : i32 to index
    %c7 = arith.constant 7 : index
    %43 = memref.load %arg1[%42, %c7] : memref<6x8xi32, #tpu.memory_space<smem>>
    %c7_i32 = arith.constant 7 : i32
    %c0_i32_21 = arith.constant 0 : i32
    %44 = tpu.memref_slice %arg3[%43, %c0_i32_21] : memref<128x32xf32, #tpu.memory_space<any>> -> memref<1x32xf32, #tpu.memory_space<any>>
    %c7_i32_22 = arith.constant 7 : i32
    %c0_i32_23 = arith.constant 0 : i32
    %45 = tpu.memref_slice %arg14[%c7_i32_22, %c0_i32_23] : memref<8x32xf32, #tpu.memory_space<vmem>> -> memref<1x32xf32, #tpu.memory_space<vmem>>
    %46 = tpu.memref_slice %arg15[%c7_i32] : memref<8x!tpu.dma_semaphore, #tpu.memory_space<semaphore_mem>> -> memref<1x!tpu.dma_semaphore, #tpu.memory_space<semaphore_mem>>
    %47 = tpu.memref_squeeze %46 : memref<1x!tpu.dma_semaphore, #tpu.memory_space<semaphore_mem>> -> memref<!tpu.dma_semaphore, #tpu.memory_space<semaphore_mem>>
    tpu.enqueue_dma source(%44 : memref<1x32xf32, #tpu.memory_space<any>>) target(%45 : memref<1x32xf32, #tpu.memory_space<vmem>>) target_semaphore(%47 : memref<!tpu.dma_semaphore, #tpu.memory_space<semaphore_mem>>)
    %c0_i32_24 = arith.constant 0 : i32
    %48 = arith.cmpi eq, %arg0, %c0_i32_24 : i32
    %49 = arith.extui %48 : i1 to i32
    %c0_i32_25 = arith.constant 0 : i32
    %50 = arith.cmpi ne, %49, %c0_i32_25 : i32
    scf.if %50 {
      %c0_104 = arith.constant 0 : index
      %c0_105 = arith.constant 0 : index
      %164 = vector.load %arg2[%c0_104, %c0_105] : memref<8x128xf32, #tpu.memory_space<vmem>>, vector<8x128xf32>
      %c0_106 = arith.constant 0 : index
      %c0_107 = arith.constant 0 : index
      %165 = vector.load %arg13[%c0_106, %c0_107] : memref<8x128xf32, #tpu.memory_space<vmem>>, vector<8x128xf32>
      tpu.vector_store %arg13[%c0_106, %c0_107], %164 {strides = array<i32>} : memref<8x128xf32, #tpu.memory_space<vmem>>, vector<8x128xf32>,
    } else {
    }
    %c0_26 = arith.constant 0 : index
    %c0_27 = arith.constant 0 : index
    %51 = vector.load %arg13[%c0_26, %c0_27] : memref<8x128xf32, #tpu.memory_space<vmem>>, vector<8x128xf32>
    %52 = vector.extract_strided_slice %51 {offsets = [0, 0], sizes = [8, 32], strides = [1, 1]} : vector<8x128xf32> to vector<8x32xf32>
    %53 = vector.extract_strided_slice %51 {offsets = [0, 32], sizes = [8, 32], strides = [1, 1]} : vector<8x128xf32> to vector<8x32xf32>
    %54 = vector.extract_strided_slice %51 {offsets = [0, 64], sizes = [8, 32], strides = [1, 1]} : vector<8x128xf32> to vector<8x32xf32>
    %55 = vector.extract_strided_slice %51 {offsets = [0, 96], sizes = [8, 32], strides = [1, 1]} : vector<8x128xf32> to vector<8x32xf32>
    %56 = tpu.iota {dimensions = array<i32: 1>} : vector<1x128xi32>
    %c64_i32 = arith.constant 64 : i32
    %57 = vector.broadcast %c64_i32 : i32 to vector<1x128xi32>
    %58 = arith.cmpi sge, %56, %57 : vector<1x128xi32>
    %c96_i32 = arith.constant 96 : i32
    %59 = vector.broadcast %c96_i32 : i32 to vector<1x128xi32>
    %60 = arith.cmpi slt, %56, %59 : vector<1x128xi32>
    %61 = arith.andi %58, %60 : vector<1x128xi1>
    %cst = arith.constant 1.000000e+00 : f32
    %cst_28 = arith.constant 5.000000e-01 : f32
    %62 = vector.broadcast %cst : f32 to vector<1x128xf32>
    %63 = vector.broadcast %cst_28 : f32 to vector<1x128xf32>
    %64 = arith.select %61, %62, %63 : vector<1x128xi1>, vector<1x128xf32>
    %c0_i32_29 = arith.constant 0 : i32
    %c0_i32_30 = arith.constant 0 : i32
    %c0_i32_31 = arith.constant 0 : i32
    %65 = tpu.memref_slice %arg3[%c0_i32_30, %c0_i32_31] : memref<128x32xf32, #tpu.memory_space<any>> -> memref<1x32xf32, #tpu.memory_space<any>>
    %c0_i32_32 = arith.constant 0 : i32
    %c0_i32_33 = arith.constant 0 : i32
    %66 = tpu.memref_slice %arg14[%c0_i32_32, %c0_i32_33] : memref<8x32xf32, #tpu.memory_space<vmem>> -> memref<1x32xf32, #tpu.memory_space<vmem>>
    %67 = tpu.memref_slice %arg15[%c0_i32_29] : memref<8x!tpu.dma_semaphore, #tpu.memory_space<semaphore_mem>> -> memref<1x!tpu.dma_semaphore, #tpu.memory_space<semaphore_mem>>
    %68 = tpu.memref_squeeze %67 : memref<1x!tpu.dma_semaphore, #tpu.memory_space<semaphore_mem>> -> memref<!tpu.dma_semaphore, #tpu.memory_space<semaphore_mem>>
    tpu.wait_dma2 semaphore(%68 : memref<!tpu.dma_semaphore, #tpu.memory_space<semaphore_mem>>) src(%65 : memref<1x32xf32, #tpu.memory_space<any>>) dst(%66 : memref<1x32xf32, #tpu.memory_space<vmem>>)
    %c1_i32_34 = arith.constant 1 : i32
    %c0_i32_35 = arith.constant 0 : i32
    %c0_i32_36 = arith.constant 0 : i32
    %69 = tpu.memref_slice %arg3[%c0_i32_35, %c0_i32_36] : memref<128x32xf32, #tpu.memory_space<any>> -> memref<1x32xf32, #tpu.memory_space<any>>
    %c1_i32_37 = arith.constant 1 : i32
    %c0_i32_38 = arith.constant 0 : i32
    %70 = tpu.memref_slice %arg14[%c1_i32_37, %c0_i32_38] : memref<8x32xf32, #tpu.memory_space<vmem>> -> memref<1x32xf32, #tpu.memory_space<vmem>>
    %71 = tpu.memref_slice %arg15[%c1_i32_34] : memref<8x!tpu.dma_semaphore, #tpu.memory_space<semaphore_mem>> -> memref<1x!tpu.dma_semaphore, #tpu.memory_space<semaphore_mem>>
    %72 = tpu.memref_squeeze %71 : memref<1x!tpu.dma_semaphore, #tpu.memory_space<semaphore_mem>> -> memref<!tpu.dma_semaphore, #tpu.memory_space<semaphore_mem>>
    tpu.wait_dma2 semaphore(%72 : memref<!tpu.dma_semaphore, #tpu.memory_space<semaphore_mem>>) src(%69 : memref<1x32xf32, #tpu.memory_space<any>>) dst(%70 : memref<1x32xf32, #tpu.memory_space<vmem>>)
    %c2_i32_39 = arith.constant 2 : i32
    %c0_i32_40 = arith.constant 0 : i32
    %c0_i32_41 = arith.constant 0 : i32
    %73 = tpu.memref_slice %arg3[%c0_i32_40, %c0_i32_41] : memref<128x32xf32, #tpu.memory_space<any>> -> memref<1x32xf32, #tpu.memory_space<any>>
    %c2_i32_42 = arith.constant 2 : i32
    %c0_i32_43 = arith.constant 0 : i32
    %74 = tpu.memref_slice %arg14[%c2_i32_42, %c0_i32_43] : memref<8x32xf32, #tpu.memory_space<vmem>> -> memref<1x32xf32, #tpu.memory_space<vmem>>
    %75 = tpu.memref_slice %arg15[%c2_i32_39] : memref<8x!tpu.dma_semaphore, #tpu.memory_space<semaphore_mem>> -> memref<1x!tpu.dma_semaphore, #tpu.memory_space<semaphore_mem>>
    %76 = tpu.memref_squeeze %75 : memref<1x!tpu.dma_semaphore, #tpu.memory_space<semaphore_mem>> -> memref<!tpu.dma_semaphore, #tpu.memory_space<semaphore_mem>>
    tpu.wait_dma2 semaphore(%76 : memref<!tpu.dma_semaphore, #tpu.memory_space<semaphore_mem>>) src(%73 : memref<1x32xf32, #tpu.memory_space<any>>) dst(%74 : memref<1x32xf32, #tpu.memory_space<vmem>>)
    %c3_i32_44 = arith.constant 3 : i32
    %c0_i32_45 = arith.constant 0 : i32
    %c0_i32_46 = arith.constant 0 : i32
    %77 = tpu.memref_slice %arg3[%c0_i32_45, %c0_i32_46] : memref<128x32xf32, #tpu.memory_space<any>> -> memref<1x32xf32, #tpu.memory_space<any>>
    %c3_i32_47 = arith.constant 3 : i32
    %c0_i32_48 = arith.constant 0 : i32
    %78 = tpu.memref_slice %arg14[%c3_i32_47, %c0_i32_48] : memref<8x32xf32, #tpu.memory_space<vmem>> -> memref<1x32xf32, #tpu.memory_space<vmem>>
    %79 = tpu.memref_slice %arg15[%c3_i32_44] : memref<8x!tpu.dma_semaphore, #tpu.memory_space<semaphore_mem>> -> memref<1x!tpu.dma_semaphore, #tpu.memory_space<semaphore_mem>>
    %80 = tpu.memref_squeeze %79 : memref<1x!tpu.dma_semaphore, #tpu.memory_space<semaphore_mem>> -> memref<!tpu.dma_semaphore, #tpu.memory_space<semaphore_mem>>
    tpu.wait_dma2 semaphore(%80 : memref<!tpu.dma_semaphore, #tpu.memory_space<semaphore_mem>>) src(%77 : memref<1x32xf32, #tpu.memory_space<any>>) dst(%78 : memref<1x32xf32, #tpu.memory_space<vmem>>)
    %c4_i32_49 = arith.constant 4 : i32
    %c0_i32_50 = arith.constant 0 : i32
    %c0_i32_51 = arith.constant 0 : i32
    %81 = tpu.memref_slice %arg3[%c0_i32_50, %c0_i32_51] : memref<128x32xf32, #tpu.memory_space<any>> -> memref<1x32xf32, #tpu.memory_space<any>>
    %c4_i32_52 = arith.constant 4 : i32
    %c0_i32_53 = arith.constant 0 : i32
    %82 = tpu.memref_slice %arg14[%c4_i32_52, %c0_i32_53] : memref<8x32xf32, #tpu.memory_space<vmem>> -> memref<1x32xf32, #tpu.memory_space<vmem>>
    %83 = tpu.memref_slice %arg15[%c4_i32_49] : memref<8x!tpu.dma_semaphore, #tpu.memory_space<semaphore_mem>> -> memref<1x!tpu.dma_semaphore, #tpu.memory_space<semaphore_mem>>
    %84 = tpu.memref_squeeze %83 : memref<1x!tpu.dma_semaphore, #tpu.memory_space<semaphore_mem>> -> memref<!tpu.dma_semaphore, #tpu.memory_space<semaphore_mem>>
    tpu.wait_dma2 semaphore(%84 : memref<!tpu.dma_semaphore, #tpu.memory_space<semaphore_mem>>) src(%81 : memref<1x32xf32, #tpu.memory_space<any>>) dst(%82 : memref<1x32xf32, #tpu.memory_space<vmem>>)
    %c5_i32_54 = arith.constant 5 : i32
    %c0_i32_55 = arith.constant 0 : i32
    %c0_i32_56 = arith.constant 0 : i32
    %85 = tpu.memref_slice %arg3[%c0_i32_55, %c0_i32_56] : memref<128x32xf32, #tpu.memory_space<any>> -> memref<1x32xf32, #tpu.memory_space<any>>
    %c5_i32_57 = arith.constant 5 : i32
    %c0_i32_58 = arith.constant 0 : i32
    %86 = tpu.memref_slice %arg14[%c5_i32_57, %c0_i32_58] : memref<8x32xf32, #tpu.memory_space<vmem>> -> memref<1x32xf32, #tpu.memory_space<vmem>>
    %87 = tpu.memref_slice %arg15[%c5_i32_54] : memref<8x!tpu.dma_semaphore, #tpu.memory_space<semaphore_mem>> -> memref<1x!tpu.dma_semaphore, #tpu.memory_space<semaphore_mem>>
    %88 = tpu.memref_squeeze %87 : memref<1x!tpu.dma_semaphore, #tpu.memory_space<semaphore_mem>> -> memref<!tpu.dma_semaphore, #tpu.memory_space<semaphore_mem>>
    tpu.wait_dma2 semaphore(%88 : memref<!tpu.dma_semaphore, #tpu.memory_space<semaphore_mem>>) src(%85 : memref<1x32xf32, #tpu.memory_space<any>>) dst(%86 : memref<1x32xf32, #tpu.memory_space<vmem>>)
    %c6_i32_59 = arith.constant 6 : i32
    %c0_i32_60 = arith.constant 0 : i32
    %c0_i32_61 = arith.constant 0 : i32
    %89 = tpu.memref_slice %arg3[%c0_i32_60, %c0_i32_61] : memref<128x32xf32, #tpu.memory_space<any>> -> memref<1x32xf32, #tpu.memory_space<any>>
    %c6_i32_62 = arith.constant 6 : i32
    %c0_i32_63 = arith.constant 0 : i32
    %90 = tpu.memref_slice %arg14[%c6_i32_62, %c0_i32_63] : memref<8x32xf32, #tpu.memory_space<vmem>> -> memref<1x32xf32, #tpu.memory_space<vmem>>
    %91 = tpu.memref_slice %arg15[%c6_i32_59] : memref<8x!tpu.dma_semaphore, #tpu.memory_space<semaphore_mem>> -> memref<1x!tpu.dma_semaphore, #tpu.memory_space<semaphore_mem>>
    %92 = tpu.memref_squeeze %91 : memref<1x!tpu.dma_semaphore, #tpu.memory_space<semaphore_mem>> -> memref<!tpu.dma_semaphore, #tpu.memory_space<semaphore_mem>>
    tpu.wait_dma2 semaphore(%92 : memref<!tpu.dma_semaphore, #tpu.memory_space<semaphore_mem>>) src(%89 : memref<1x32xf32, #tpu.memory_space<any>>) dst(%90 : memref<1x32xf32, #tpu.memory_space<vmem>>)
    %c7_i32_64 = arith.constant 7 : i32
    %c0_i32_65 = arith.constant 0 : i32
    %c0_i32_66 = arith.constant 0 : i32
    %93 = tpu.memref_slice %arg3[%c0_i32_65, %c0_i32_66] : memref<128x32xf32, #tpu.memory_space<any>> -> memref<1x32xf32, #tpu.memory_space<any>>
    %c7_i32_67 = arith.constant 7 : i32
    %c0_i32_68 = arith.constant 0 : i32
    %94 = tpu.memref_slice %arg14[%c7_i32_67, %c0_i32_68] : memref<8x32xf32, #tpu.memory_space<vmem>> -> memref<1x32xf32, #tpu.memory_space<vmem>>
    %95 = tpu.memref_slice %arg15[%c7_i32_64] : memref<8x!tpu.dma_semaphore, #tpu.memory_space<semaphore_mem>> -> memref<1x!tpu.dma_semaphore, #tpu.memory_space<semaphore_mem>>
    %96 = tpu.memref_squeeze %95 : memref<1x!tpu.dma_semaphore, #tpu.memory_space<semaphore_mem>> -> memref<!tpu.dma_semaphore, #tpu.memory_space<semaphore_mem>>
    tpu.wait_dma2 semaphore(%96 : memref<!tpu.dma_semaphore, #tpu.memory_space<semaphore_mem>>) src(%93 : memref<1x32xf32, #tpu.memory_space<any>>) dst(%94 : memref<1x32xf32, #tpu.memory_space<vmem>>)
    %c0_69 = arith.constant 0 : index
    %c0_70 = arith.constant 0 : index
    %97 = vector.load %arg14[%c0_69, %c0_70] : memref<8x32xf32, #tpu.memory_space<vmem>>, vector<8x32xf32>
    %c0_71 = arith.constant 0 : index
    %c0_72 = arith.constant 0 : index
    %98 = vector.load %arg4[%c0_71, %c0_72] : memref<32x128xf32, #tpu.memory_space<vmem>>, vector<32x128xf32>
    %c0_73 = arith.constant 0 : index
    %c0_74 = arith.constant 0 : index
    %99 = vector.load %arg5[%c0_73, %c0_74] : memref<32x128xf32, #tpu.memory_space<vmem>>, vector<32x128xf32>
    %c0_75 = arith.constant 0 : index
    %c0_76 = arith.constant 0 : index
    %100 = vector.load %arg6[%c0_75, %c0_76] : memref<1x128xf32, #tpu.memory_space<vmem>>, vector<1x128xf32>
    %cst_77 = arith.constant dense<0.000000e+00> : vector<8x128xf32>
    %101 = tpu.matmul %97, %98, %cst_77 {dimension_numbers = #tpu.dot_dimension_numbers<[1], [0], [0], [1], [0, 0, 1, 1], [], []>} : vector<8x32xf32>, vector<32x128xf32>, vector<8x128xf32> -> vector<8x128xf32>
    %cst_78 = arith.constant dense<0.000000e+00> : vector<8x128xf32>
    %102 = tpu.matmul %52, %99, %cst_78 {dimension_numbers = #tpu.dot_dimension_numbers<[1], [0], [0], [1], [0, 0, 1, 1], [], []>} : vector<8x32xf32>, vector<32x128xf32>, vector<8x128xf32> -> vector<8x128xf32>
    %103 = arith.addf %101, %102 : vector<8x128xf32>
    %104 = vector.broadcast %100 : vector<1x128xf32> to vector<8x128xf32>
    %105 = arith.addf %103, %104 : vector<8x128xf32>
    %106 = vector.broadcast %64 : vector<1x128xf32> to vector<8x128xf32>
    %107 = arith.mulf %105, %106 : vector<8x128xf32>
    %108 = math.tanh %107 : vector<8x128xf32>
    %cst_79 = arith.constant 5.000000e-01 : f32
    %109 = vector.broadcast %cst_79 : f32 to vector<8x128xf32>
    %110 = arith.mulf %109, %108 : vector<8x128xf32>
    %cst_80 = arith.constant 5.000000e-01 : f32
    %111 = vector.broadcast %cst_80 : f32 to vector<8x128xf32>
    %112 = arith.addf %110, %111 : vector<8x128xf32>
    %113 = vector.shape_cast %61 : vector<1x128xi1> to vector<1x128xi1>
    %114 = vector.broadcast %113 : vector<1x128xi1> to vector<8x128xi1>
    %115 = arith.select %114, %108, %112 : vector<8x128xi1>, vector<8x128xf32>
    %116 = vector.extract_strided_slice %115 {offsets = [0, 0], sizes = [8, 32], strides = [1, 1]} : vector<8x128xf32> to vector<8x32xf32>
    %117 = vector.extract_strided_slice %115 {offsets = [0, 32], sizes = [8, 32], strides = [1, 1]} : vector<8x128xf32> to vector<8x32xf32>
    %118 = vector.extract_strided_slice %115 {offsets = [0, 64], sizes = [8, 32], strides = [1, 1]} : vector<8x128xf32> to vector<8x32xf32>
    %119 = vector.extract_strided_slice %115 {offsets = [0, 96], sizes = [8, 32], strides = [1, 1]} : vector<8x128xf32> to vector<8x32xf32>
    %120 = arith.mulf %117, %54 : vector<8x32xf32>
    %121 = arith.mulf %116, %118 : vector<8x32xf32>
    %122 = arith.addf %120, %121 : vector<8x32xf32>
    %123 = math.tanh %122 : vector<8x32xf32>
    %124 = arith.mulf %119, %123 : vector<8x32xf32>
    %c0_81 = arith.constant 0 : index
    %c0_82 = arith.constant 0 : index
    %125 = vector.load %arg7[%c0_81, %c0_82] : memref<32x128xf32, #tpu.memory_space<vmem>>, vector<32x128xf32>
    %c0_83 = arith.constant 0 : index
    %c0_84 = arith.constant 0 : index
    %126 = vector.load %arg8[%c0_83, %c0_84] : memref<32x128xf32, #tpu.memory_space<vmem>>, vector<32x128xf32>
    %c0_85 = arith.constant 0 : index
    %c0_86 = arith.constant 0 : index
    %127 = vector.load %arg9[%c0_85, %c0_86] : memref<1x128xf32, #tpu.memory_space<vmem>>, vector<1x128xf32>
    %cst_87 = arith.constant dense<0.000000e+00> : vector<8x128xf32>
    %128 = tpu.matmul %124, %125, %cst_87 {dimension_numbers = #tpu.dot_dimension_numbers<[1], [0], [0], [1], [0, 0, 1, 1], [], []>} : vector<8x32xf32>, vector<32x128xf32>, vector<8x128xf32> -> vector<8x128xf32>
    %cst_88 = arith.constant dense<0.000000e+00> : vector<8x128xf32>
    %129 = tpu.matmul %53, %126, %cst_88 {dimension_numbers = #tpu.dot_dimension_numbers<[1], [0], [0], [1], [0, 0, 1, 1], [], []>} : vector<8x32xf32>, vector<32x128xf32>, vector<8x128xf32> -> vector<8x128xf32>
    %130 = arith.addf %128, %129 : vector<8x128xf32>
    %131 = vector.broadcast %127 : vector<1x128xf32> to vector<8x128xf32>
    %132 = arith.addf %130, %131 : vector<8x128xf32>
    %133 = vector.broadcast %64 : vector<1x128xf32> to vector<8x128xf32>
    %134 = arith.mulf %132, %133 : vector<8x128xf32>
    %135 = math.tanh %134 : vector<8x128xf32>
    %cst_89 = arith.constant 5.000000e-01 : f32
    %136 = vector.broadcast %cst_89 : f32 to vector<8x128xf32>
    %137 = arith.mulf %136, %135 : vector<8x128xf32>
    %cst_90 = arith.constant 5.000000e-01 : f32
    %138 = vector.broadcast %cst_90 : f32 to vector<8x128xf32>
    %139 = arith.addf %137, %138 : vector<8x128xf32>
    %140 = vector.shape_cast %61 : vector<1x128xi1> to vector<1x128xi1>
    %141 = vector.broadcast %140 : vector<1x128xi1> to vector<8x128xi1>
    %142 = arith.select %141, %135, %139 : vector<8x128xi1>, vector<8x128xf32>
    %143 = vector.extract_strided_slice %142 {offsets = [0, 0], sizes = [8, 32], strides = [1, 1]} : vector<8x128xf32> to vector<8x32xf32>
    %144 = vector.extract_strided_slice %142 {offsets = [0, 32], sizes = [8, 32], strides = [1, 1]} : vector<8x128xf32> to vector<8x32xf32>
    %145 = vector.extract_strided_slice %142 {offsets = [0, 64], sizes = [8, 32], strides = [1, 1]} : vector<8x128xf32> to vector<8x32xf32>
    %146 = vector.extract_strided_slice %142 {offsets = [0, 96], sizes = [8, 32], strides = [1, 1]} : vector<8x128xf32> to vector<8x32xf32>
    %147 = arith.mulf %144, %55 : vector<8x32xf32>
    %148 = arith.mulf %143, %145 : vector<8x32xf32>
    %149 = arith.addf %147, %148 : vector<8x32xf32>
    %150 = math.tanh %149 : vector<8x32xf32>
    %151 = arith.mulf %146, %150 : vector<8x32xf32>
    %c0_91 = arith.constant 0 : index
    %c0_92 = arith.constant 0 : index
    %152 = vector.load %arg13[%c0_91, %c0_92] : memref<8x128xf32, #tpu.memory_space<vmem>>, vector<8x32xf32>
    tpu.vector_store %arg13[%c0_91, %c0_92], %124 {strides = array<i32>} : memref<8x128xf32, #tpu.memory_space<vmem>>, vector<8x32xf32>,
    %c0_93 = arith.constant 0 : index
    %c32 = arith.constant 32 : index
    %153 = vector.load %arg13[%c0_93, %c32] : memref<8x128xf32, #tpu.memory_space<vmem>>, vector<8x32xf32>
    tpu.vector_store %arg13[%c0_93, %c32], %151 {strides = array<i32>} : memref<8x128xf32, #tpu.memory_space<vmem>>, vector<8x32xf32>,
    %c0_94 = arith.constant 0 : index
    %c64 = arith.constant 64 : index
    %154 = vector.load %arg13[%c0_94, %c64] : memref<8x128xf32, #tpu.memory_space<vmem>>, vector<8x32xf32>
    tpu.vector_store %arg13[%c0_94, %c64], %122 {strides = array<i32>} : memref<8x128xf32, #tpu.memory_space<vmem>>, vector<8x32xf32>,
    %c0_95 = arith.constant 0 : index
    %c96 = arith.constant 96 : index
    %155 = vector.load %arg13[%c0_95, %c96] : memref<8x128xf32, #tpu.memory_space<vmem>>, vector<8x32xf32>
    tpu.vector_store %arg13[%c0_95, %c96], %149 {strides = array<i32>} : memref<8x128xf32, #tpu.memory_space<vmem>>, vector<8x32xf32>,
    %c0_96 = arith.constant 0 : index
    %c0_97 = arith.constant 0 : index
    %156 = vector.load %arg10[%c0_96, %c0_97] : memref<32x128xf32, #tpu.memory_space<vmem>>, vector<32x128xf32>
    %cst_98 = arith.constant dense<0.000000e+00> : vector<8x128xf32>
    %157 = tpu.matmul %151, %156, %cst_98 {dimension_numbers = #tpu.dot_dimension_numbers<[1], [0], [0], [1], [0, 0, 1, 1], [], []>} : vector<8x32xf32>, vector<32x128xf32>, vector<8x128xf32> -> vector<8x128xf32>
    %c0_99 = arith.constant 0 : index
    %c0_100 = arith.constant 0 : index
    %158 = vector.load %arg11[%c0_99, %c0_100] : memref<1x128xf32, #tpu.memory_space<vmem>>, vector<1x128xf32>
    %159 = vector.broadcast %158 : vector<1x128xf32> to vector<8x128xf32>
    %160 = arith.addf %157, %159 : vector<8x128xf32>
    %c0_101 = arith.constant 0 : index
    %c0_102 = arith.constant 0 : index
    %c0_103 = arith.constant 0 : index
    %161 = vector.load %arg12[%c0_101, %c0_102, %c0_103] : memref<1x8x128xf32, #tpu.memory_space<vmem>>, vector<1x8x128xf32>
    %162 = vector.shape_cast %161 : vector<1x8x128xf32> to vector<8x128xf32>
    %163 = vector.shape_cast %160 : vector<8x128xf32> to vector<1x8x128xf32>
    tpu.vector_store %arg12[%c0_101, %c0_102, %c0_103], %163 {strides = array<i32>} : memref<1x8x128xf32, #tpu.memory_space<vmem>>, vector<1x8x128xf32>,
    return
  }
  func.func @transform_0(%arg0: i32, %arg1: memref<6x8xi32, #tpu.memory_space<smem>>) -> (i32, i32) {
    %c0_i32 = arith.constant 0 : i32
    %c0_i32_0 = arith.constant 0 : i32
    %c0_i32_1 = arith.constant 0 : i32
    return %c0_i32, %c0_i32_0 : i32, i32
  }
  func.func @transform_2(%arg0: i32, %arg1: memref<6x8xi32, #tpu.memory_space<smem>>) -> (i32, i32) {
    %c0_i32 = arith.constant 0 : i32
    %c0_i32_0 = arith.constant 0 : i32
    %c0_i32_1 = arith.constant 0 : i32
    return %c0_i32, %c0_i32_0 : i32, i32
  }
  func.func @transform_3(%arg0: i32, %arg1: memref<6x8xi32, #tpu.memory_space<smem>>) -> (i32, i32) {
    %c0_i32 = arith.constant 0 : i32
    %c0_i32_0 = arith.constant 0 : i32
    %c0_i32_1 = arith.constant 0 : i32
    return %c0_i32, %c0_i32_0 : i32, i32
  }
  func.func @transform_4(%arg0: i32, %arg1: memref<6x8xi32, #tpu.memory_space<smem>>) -> (i32, i32) {
    %c0_i32 = arith.constant 0 : i32
    %c0_i32_0 = arith.constant 0 : i32
    %c0_i32_1 = arith.constant 0 : i32
    return %c0_i32, %c0_i32_0 : i32, i32
  }
  func.func @transform_5(%arg0: i32, %arg1: memref<6x8xi32, #tpu.memory_space<smem>>) -> (i32, i32) {
    %c0_i32 = arith.constant 0 : i32
    %c0_i32_0 = arith.constant 0 : i32
    %c0_i32_1 = arith.constant 0 : i32
    return %c0_i32, %c0_i32_0 : i32, i32
  }
  func.func @transform_6(%arg0: i32, %arg1: memref<6x8xi32, #tpu.memory_space<smem>>) -> (i32, i32) {
    %c0_i32 = arith.constant 0 : i32
    %c0_i32_0 = arith.constant 0 : i32
    %c0_i32_1 = arith.constant 0 : i32
    return %c0_i32, %c0_i32_0 : i32, i32
  }
  func.func @transform_7(%arg0: i32, %arg1: memref<6x8xi32, #tpu.memory_space<smem>>) -> (i32, i32) {
    %c0_i32 = arith.constant 0 : i32
    %c0_i32_0 = arith.constant 0 : i32
    %c0_i32_1 = arith.constant 0 : i32
    return %c0_i32, %c0_i32_0 : i32, i32
  }
  func.func @transform_8(%arg0: i32, %arg1: memref<6x8xi32, #tpu.memory_space<smem>>) -> (i32, i32) {
    %c0_i32 = arith.constant 0 : i32
    %c0_i32_0 = arith.constant 0 : i32
    %c0_i32_1 = arith.constant 0 : i32
    return %c0_i32, %c0_i32_0 : i32, i32
  }
  func.func @transform_9(%arg0: i32, %arg1: memref<6x8xi32, #tpu.memory_space<smem>>) -> (i32, i32) {
    %c0_i32 = arith.constant 0 : i32
    %c0_i32_0 = arith.constant 0 : i32
    %c0_i32_1 = arith.constant 0 : i32
    return %c0_i32, %c0_i32_0 : i32, i32
  }
  func.func @transform_10(%arg0: i32, %arg1: memref<6x8xi32, #tpu.memory_space<smem>>) -> (i32, i32, i32) {
    %c0_i32 = arith.constant 0 : i32
    %c0_i32_0 = arith.constant 0 : i32
    %c0_i32_1 = arith.constant 0 : i32
    return %arg0, %c0_i32, %c0_i32_0 : i32, i32, i32
  }
  func.func @transform_11(%arg0: i32, %arg1: memref<6x8xi32, #tpu.memory_space<smem>>) -> (i32, i32) {
    %c0_i32 = arith.constant 0 : i32
    %c0_i32_0 = arith.constant 0 : i32
    %c0_i32_1 = arith.constant 0 : i32
    return %c0_i32, %c0_i32_0 : i32, i32
  }
}

</mosaic_0001>

<bundles_post_ra>
// kernel: decoder_decode.1
= control target key start
LH: loop header
LB: loop body
LE: loop exit
PB: predicated region body
PF: predicated region fallthrough
CT: control target
= control target key end

     0   :  { %s2112_s0 = inlined_call_operand.vmem [shape: s32[6,8], index: 0, kind: input, shape index: {}]   ;;  %s2113_s1 = inlined_call_operand.vmem [shape: f32[8,128], index: 1, kind: input, shape index: {}]   ;;  %s2114_s2 = inlined_call_operand.vmem [shape: f32[128,32], index: 2, kind: input, shape index: {}]   ;;  %s2115_s3 = inlined_call_operand.vmem [shape: f32[32,128], index: 3, kind: input, shape index: {}]   ;;  %s2116_s4 = inlined_call_operand.vmem [shape: f32[32,128], index: 4, kind: input, shape index: {}]   ;;  %s2117_s5 = inlined_call_operand.vmem [shape: f32[1,128], index: 5, kind: input, shape index: {}]   ;;  %s2118_s6 = inlined_call_operand.vmem [shape: f32[32,128], index: 6, kind: input, shape index: {}]   ;;  %s2119_s7 = inlined_call_operand.vmem [shape: f32[32,128], index: 7, kind: input, shape index: {}]   ;;  %s2120_s8 = inlined_call_operand.vmem [shape: f32[1,128], index: 8, kind: input, shape index: {}]   ;;  %s2121_s9 = inlined_call_operand.vmem [shape: f32[32,128], index: 9, kind: input, shape index: {}]   ;;  %s2122_s10 = inlined_call_operand.vmem [shape: f32[1,128], index: 10, kind: input, shape index: {}]   ;;  %s2123_s11 = inlined_call_operand.hbm [shape: f32[6,8,128], index: 11, kind: output, shape index: {0}]   ;;  %s2124_s12 = inlined_call_operand.vmem [shape: f32[8,128], index: 12, kind: output, shape index: {1}]  }
   0x1   :  { %s18_s23 = sshll.u32 %s2112_s0, 4  ;;  %s19_s23 = int_to_ptr.vmem [resolvable:$true] %s18_s23 }
   0x2   :  { %s1657_s24 = scalar_lea.vmem %s19_s23, 128  ;;  %p1662_p1 = scmp.lt.s32.totalorder %s19_s23, %s19_s23 }
   0x3   :  { %p1658_p0 = scmp.ne.s32.totalorder %s19_s23, %s1657_s24  ;;  %p1663_p2 = scmp.lt.s32.totalorder %s1657_s24, %s1657_s24 }
   0x5   :  { %p1664_p3 = por %p1663_p2, %p1662_p1 }
   0x7   :  { %p1665_p4 = pnand %p1664_p3, %p1658_p0 }
   0x9   :  { %1668 = shalt.err (!%p1665_p4)  }
   0xa   :  { %s1751_s25 = smov [#allocation5]  }
   0xb   :  { %21 = dma.vmem_to_smem %s19_s23, 128, %s1751_s25, [#allocation4] }
   0xc   :  { %1713 = dma.done.wait [#allocation4], 128 }
   0xd   :  { %1714 = vsyncadd [#allocation4], 4294967168 }
   0xe   :  { %23 = sfence }
   0xf   :  { %24 = vsyncpa [#allocation7], 0 }
  0x10   :  { %26 = vsyncpa [#allocation7 + $0x1], 0  ;;  %s1828_s26 = smov 0   ;;  %s1830_s27 = smov 0  }
  0x11   :  { %s1832_s0 = smov 0   ;;  %s1834_s28 = smov 0  }
  0x12 LB: > { %2131 = sst [smem:[#allocation26_spill]] %s1737_s26  ;;  %s1849_s29 = sadd.s32 4294967295, %s1749_s28   ;;  %s1749_s28 = sphi %s1834_s28, %s2145_s28   ;;  %s1745_s0 = sphi %s1832_s0, %s2147_s0   ;;  %s1741_s27 = sphi %s1830_s27, %s2149_s27   ;;  %s1737_s26 = sphi %s1828_s26, %s2148_s26  }
  0x13   : > { %2132 = sst [smem:[#allocation27_spill]] %s1745_s0  ;;  %s1466_s30 = sadd.s32 4294967294, %s1749_s28  }
  0x14   : > { %s1853_s13 = sadd.s32 1, %s1749_s28   ;;  %s228_s14 = sadd.s32 1, %s1745_s0 }
  0x15   : > { %2133 = sst [smem:[#allocation28_spill]] %s1853_s13  ;;  %s225_s15 = ssub.s32 %s1749_s28, %s1853_s13 }
  0x16   : > { %p238_p5 = scmp.ne.s32.totalorder %s1745_s0, %s1741_s27  ;;  %p226_p6 = scmp.eq.s32.totalorder %s225_s15, 0 }
  0x17   : > { %p239_p7 = scmp.eq.s32.totalorder %s1849_s29, 5  ;;  %p244_p8 = scmp.ne.s32.totalorder %s1741_s27, %s1737_s26 }
  0x18   : > { %p245_p9 = scmp.eq.s32.totalorder %s1466_s30, 5  ;;  %p1468_p12 = scmp.ge.s32.totalorder %s1749_s28, 1 }
  0x19   : > { %s1864_s16 = scalar_select %p226_p6, %s1745_s0, %s228_s14  }
  0x1a   : > { %p1866_p10 = por %p239_p7, %p238_p5  ;;  %p1870_p11 = por %p245_p9, %p244_p8 }
  0x1b   : > { %2134 = sst [smem:[#allocation29_spill]] %s1864_s16  ;;  %p311_p13 = scmp.lt.s32.totalorder %s1749_s28, 7 }
  0x1c   : > { %s2136_s18 = scalar_select %p1870_p11, 1, 0 }
  0x1d   : > { %p312_p0 = pnand %p1468_p12, %p311_p13 }
  0x1e   : > { %2137 = sst [smem:[#allocation30_spill]] %s2136_s18  ;;  %s2128_s19 = sand.u32 (!%p312_p0), 1, %s1741_s27  }
  0x1f   : > { %315 = sbr.rel (%p312_p0) target bundleno = 1804 (0x70c), region = 56  ;;  %s1878_s20 = sshll.u32 (!%p312_p0), %s1849_s29, 7 }
  0x20   : > { %s1882_s21 = sshll.u32 (!%p312_p0), %s2128_s19, 3  ;;  %s345_s22 = sld [smem:[#allocation5 + %s1878_s20]] (!%p312_p0) }
  0x26   : > { %s346_s25 = scalar_lea.vmem %s2114_s2, %s345_s22 }
  0x27   : > { %v364_v0 = vld [vmem:[%s346_s25] sm:$0x1] }
  0x28   : > { %365 = vst [vmem:[#allocation2] sm:$0x1] %v364_v0 }
  0x29   : > { %390 = vsyncadd [#allocation3], 16  ;;  %s391_s14 = sadd.s32 1, %s1878_s20 }
  0x2a   : > { %s392_s15 = sld [smem:[#allocation5 + %s391_s14]] }
  0x30   : > { %s393_s13 = scalar_lea.vmem %s2114_s2, %s392_s15 }
  0x31   : > { %v413_v1 = vld [vmem:[%s393_s13] sm:$0x1] }
  0x32   : > { %414 = vst [vmem:[#allocation2 + $0x1] sm:$0x1] %v413_v1 }
  0x33   : > { %439 = vsyncadd [#allocation3 + $0x1], 16  ;;  %s440_s19 = sadd.s32 2, %s1878_s20 }
  0x34   : > { %s441_s18 = sld [smem:[#allocation5 + %s440_s19]] }
  0x3a   : > { %s442_s22 = scalar_lea.vmem %s2114_s2, %s441_s18 }
  0x3b   : > { %v462_v2 = vld [vmem:[%s442_s22] sm:$0x1] }
  0x3c   : > { %463 = vst [vmem:[#allocation2 + $0x2] sm:$0x1] %v462_v2 }
  0x3d   : > { %488 = vsyncadd [#allocation3 + $0x2], 16  ;;  %s489_s24 = sadd.s32 3, %s1878_s20 }
  0x3e   : > { %s490_s25 = sld [smem:[#allocation5 + %s489_s24]] }
  0x44   : > { %s491_s0 = scalar_lea.vmem %s2114_s2, %s490_s25 }
  0x45   : > { %v511_v3 = vld [vmem:[%s491_s0] sm:$0x1] }
  0x46   : > { %512 = vst [vmem:[#allocation2 + $0x3] sm:$0x1] %v511_v3 }
  0x47   : > { %537 = vsyncadd [#allocation3 + $0x3], 16  ;;  %s538_s13 = sadd.s32 4, %s1878_s20 }
  0x48   : > { %s539_s16 = sld [smem:[#allocation5 + %s538_s13]] }
  0x4e   : > { %s540_s26 = scalar_lea.vmem %s2114_s2, %s539_s16 }
  0x4f   : > { %v560_v4 = vld [vmem:[%s540_s26] sm:$0x1] }
  0x50   : > { %561 = vst [vmem:[#allocation2 + $0x4] sm:$0x1] %v560_v4 }
  0x51   : > { %586 = vsyncadd [#allocation3 + $0x4], 16  ;;  %s587_s18 = sadd.s32 5, %s1878_s20 }
  0x52   : > { %s588_s23 = sld [smem:[#allocation5 + %s587_s18]] }
  0x58   : > { %s589_s30 = scalar_lea.vmem %s2114_s2, %s588_s23 }
  0x59   : > { %v609_v5 = vld [vmem:[%s589_s30] sm:$0x1] }
  0x5a   : > { %610 = vst [vmem:[#allocation2 + $0x5] sm:$0x1] %v609_v5 }
  0x5b   : > { %635 = vsyncadd [#allocation3 + $0x5], 16  ;;  %s636_s25 = sadd.s32 6, %s1878_s20 }
  0x5c   : > { %s637_s14 = sld [smem:[#allocation5 + %s636_s25]] }
  0x62   : > { %s638_s16 = scalar_lea.vmem %s2114_s2, %s637_s14 }
  0x63   : > { %v658_v6 = vld [vmem:[%s638_s16] sm:$0x1] }
  0x64   : > { %659 = vst [vmem:[#allocation2 + $0x6] sm:$0x1] %v658_v6 }
  0x65   : > { %684 = vsyncadd [#allocation3 + $0x6], 16  ;;  %s685_s19 = sadd.s32 7, %s1878_s20 }
  0x66   : > { %s686_s15 = sld [smem:[#allocation5 + %s685_s19]] }
  0x6c   : > { %s687_s23 = scalar_lea.vmem %s2114_s2, %s686_s15 }
  0x6d   : > { %v707_v7 = vld [vmem:[%s687_s23] sm:$0x1] }
  0x6e   : > { %708 = vst [vmem:[#allocation2 + $0x7] sm:$0x1] %v707_v7 }
  0x6f   : > { %733 = vsyncadd [#allocation3 + $0x7], 16  ;;  %p1471_p1 = scmp.ne.s32.totalorder %s1849_s29, 0 }
  0x70   : > { %v738_v8 = vld [vmem:[%s2113_s1] sm:$0xff] (!%p1471_p1) }
  0x71   : > { %737 = sbr.rel (%p1471_p1) target bundleno = 120 (0x78), region = 300  ;;  %739 = vst [vmem:[%s2124_s12] sm:$0xff] (!%p1471_p1), %v738_v8 }
  0x78 PF: > { %v1927_v9 = vld [vmem:[%s2124_s12] sm:$0xff]  ;;  %v741_v10 = vlaneseq  ;;  %v1752_v13 = vmov 0.5  }
  0x7a   : > { %v742_v11 = vand.u32 127, %v741_v10 }
  0x7c   : > { %vm743_vm0 = vcmp.ge.s32.totalorder %v742_v11, 64  ;;  %vm744_vm1 = vcmp.lt.s32.totalorder %v742_v11, 96 }
  0x7d   : > { %vm1929_vm2 = vmand %vm743_vm0, %vm744_vm1 }
  0x7e   : > { %v1935_v14 = vsel %vm1929_vm2, 1.0, %v1752_v13 }
  0x7f   : > { %1715 = dma.done.wait [#allocation3], 16 }
  0x80   : > { %1716 = vsyncadd [#allocation3], 4294967280 }
  0x81   : > { %1717 = dma.done.wait [#allocation3 + $0x1], 16 }
  0x82   : > { %1718 = vsyncadd [#allocation3 + $0x1], 4294967280 }
  0x83   : > { %1719 = dma.done.wait [#allocation3 + $0x2], 16 }
  0x84   : > { %1720 = vsyncadd [#allocation3 + $0x2], 4294967280 }
  0x85   : > { %1721 = dma.done.wait [#allocation3 + $0x3], 16 }
  0x86   : > { %1722 = vsyncadd [#allocation3 + $0x3], 4294967280 }
  0x87   : > { %1723 = dma.done.wait [#allocation3 + $0x4], 16 }
  0x88   : > { %1724 = vsyncadd [#allocation3 + $0x4], 4294967280 }
  0x89   : > { %1725 = dma.done.wait [#allocation3 + $0x5], 16 }
  0x8a   : > { %1726 = vsyncadd [#allocation3 + $0x5], 4294967280 }
  0x8b   : > { %1727 = dma.done.wait [#allocation3 + $0x6], 16 }
  0x8c   : > { %1728 = vsyncadd [#allocation3 + $0x6], 4294967280 }
  0x8d   : > { %1729 = dma.done.wait [#allocation3 + $0x7], 16 }
  0x8e   : > { %1730 = vsyncadd [#allocation3 + $0x7], 4294967280  ;;  %v1753_v15 = vmov 0.0|0.0   ;;  %vm1754_vm3 = vmmov 0   ;;  %v1755_v16 = vmov 0.0   ;;  %v769_v17 = vld [vmem:[%s2116_s4] sm:$0xff]  ;;  %s2066_s23 = scalar_lea.hbm %s2123_s11, %s1878_s20 }
  0x8f   : > { %1572 = vmatprep.subr.bf16.mxu0 %v1753_v15  ;;  %1578 = vmatprep.subr.bf16.mxu1 %v1753_v15  ;;  %v770_v18 = vld [vmem:[%s2116_s4 + $0x8] sm:$0xff]  ;;  %v765_v19 = vld [vmem:[%s2115_s3] sm:$0xff]  ;;  %v771_v22 = vld [vmem:[%s2116_s4 + $0x10] sm:$0xff]  ;;  %vm774_vm4 = vcmask 261120   ;;  %s1756_s14 = smov 64   ;;  %s1757_s0 = smov 96  }
  0x90   : > { %1525 = vmatprep.mubr.msk.f32.mxu0 %vm1754_vm3, %v1755_v16  ;;  %1536 = vmatprep.mubr.msk.f32.mxu1 %vm1754_vm3, %v1755_v16  ;;  %v1573_v20 = vpack.c.bf16 %v770_v18, %v769_v17  ;;  %v766_v21 = vld [vmem:[%s2115_s3 + $0x8] sm:$0xff]  ;;  %v772_v23 = vld [vmem:[%s2116_s4 + $0x18] sm:$0xff]  ;;  %v767_v25 = vld [vmem:[%s2115_s3 + $0x10] sm:$0xff]  ;;  %s1758_s29 = smov 32   ;;  %vm1149_vm5 = vcmask 523520   ;;  %vm1155_vm6 = vcmask 785920  }
  0x91   : > { %v1579_v24 = vpack.c.bf16 %v766_v21, %v765_v19  ;;  %v768_v26 = vld [vmem:[%s2115_s3 + $0x18] sm:$0xff]  ;;  %v1576_v27 = vpack.c.bf16 %v772_v23, %v771_v22  ;;  %v764_v29 = vld [vmem:[#allocation2] sm:$0xff]  ;;  %v960_v39 = vld [vmem:[%s2119_s7 + $0x8] sm:$0xff]  ;;  %vm1161_vm7 = vcmask 1048320   ;;  %s2140_s19 = scalar_lea.vmem [#allocation6], %s1882_s21  ;;  %s2142_s24 = sand.u32 1, %s1741_s27  }
  0x92   : > { %1574 = vmatpush3.bf16.msra.mxu0 %v1573_v20  ;;  %v1582_v28 = vpack.c.bf16 %v768_v26, %v767_v25  ;;  %v1474_v31 = vld [vmem:[%s2117_s5] ss:$0 sm:$0xff]  ;;  %v961_v40 = vld [vmem:[%s2119_s7 + $0x10] sm:$0xff]  ;;  %v962_v42 = vld [vmem:[%s2119_s7 + $0x18] sm:$0xff]  ;;  %s1263_s15 = sshll.u32 %s2140_s19, 4  ;;  %s2141_s22 = smov %s2140_s19  ;;  %s2068_s15 = int_to_ptr.vmem [resolvable:$true] %s1263_s15 }
  0x93   : > { %1580 = vmatpush3.bf16.msra.mxu1 %v1579_v24  ;;  %1575 = vmatprep.subr.bf16.mxu0 %v1753_v15  ;;  %v959_v38 = vld [vmem:[%s2119_s7] sm:$0xff]  ;;  %v1588_v44 = vpack.c.bf16 %v962_v42, %v961_v40  ;;  %v956_v55 = vld [vmem:[%s2118_s6 + $0x8] sm:$0xff]  ;;  %v957_v56 = vld [vmem:[%s2118_s6 + $0x10] sm:$0xff]  ;;  %s1250_s30 = scalar_lea.sflag [#allocation7], %s2142_s24  ;;  %s1759_s25 = smov [#allocation6]  }
  0x94   : > { %1581 = vmatprep.subr.bf16.mxu1 %v1753_v15  ;;  %v1585_v41 = vpack.c.bf16 %v960_v39, %v959_v38  ;;  %v955_v54 = vld [vmem:[%s2118_s6] sm:$0xff]  ;;  %v958_v58 = vld [vmem:[%s2118_s6 + $0x18] sm:$0xff]  ;;  %v1164_v12 = vld [vmem:[%s2121_s9 + $0x8] sm:$0xff] }
  0x95   : > { %v1591_v57 = vpack.c.bf16 %v956_v55, %v955_v54  ;;  %v1594_v59 = vpack.c.bf16 %v958_v58, %v957_v56  ;;  %v1477_v2 = vld [vmem:[%s2120_s8] ss:$0 sm:$0xff]  ;;  %v1165_v21 = vld [vmem:[%s2121_s9 + $0x10] sm:$0xff]  ;;  %v1166_v23 = vld [vmem:[%s2121_s9 + $0x18] sm:$0xff] }
  0x96   : > { %1577 = vmatpush3.bf16.msra.mxu0 %v1576_v27  ;;  %v1600_v24 = vpack.c.bf16 %v1166_v23, %v1165_v21 }
  0x97   : > { %1583 = vmatpush3.bf16.msra.mxu1 %v1582_v28  ;;  %1584 = vmatprep.subr.bf16.mxu0 %v1753_v15 }
  0x98   : > { %1590 = vmatprep.subr.bf16.mxu1 %v1753_v15 }
  0x99   : > { %1526 = vmatmul.mubr.msk.f32.vlgmr.msra.gmra.mrb[0].mxu0 %vm774_vm4, %v1927_v9 }
  0x9a   : > { %1537 = vmatmul.mubr.msk.f32.vlgmr.msra.gmra.mrb[0].mxu1 %vm774_vm4, %v764_v29  ;;  %1547 = vmatprep.mubr.msk.f32.mxu0 %vm1754_vm3, %v1755_v16 }
  0x9b   : > { %1558 = vmatprep.mubr.msk.f32.mxu1 %vm1754_vm3, %v1755_v16  ;;  %1586 = vmatpush3.bf16.msra.mxu0 %v1585_v41 }
  0x9c   : > { %1587 = vmatprep.subr.bf16.mxu0 %v1753_v15  ;;  %1592 = vmatpush3.bf16.msra.mxu1 %v1591_v57 }
  0x9d   : > { %1593 = vmatprep.subr.bf16.mxu1 %v1753_v15 }
  0x9f   : > { %1589 = vmatpush3.bf16.msra.mxu0 %v1588_v44 }
  0xa0   : > { %1596 = vmatprep.subr.bf16.mxu0 %v1753_v15  ;;  %1595 = vmatpush3.bf16.msra.mxu1 %v1594_v59 }
 0x16c   : > { %v844_v30 = vpop.f32.mrb[0].mxu0 }
 0x16d   : > { %v917_v32 = vpop.f32.mrb[0].mxu1  ;;  %v1527_v33 = vpop.f32.mrb[1].mxu0 }
 0x16e   : > { %v918_v34 = vadd.f32 %v917_v32, %v844_v30  ;;  %v1538_v35 = vpop.f32.mrb[1].mxu1 }
 0x170   : > { %v927_v36 = vadd.f32 %v1474_v31, %v918_v34  ;;  %v1478_v31 = vld [vmem:[%s2122_s10] ss:$0 sm:$0xff] }
 0x172   : > { %v928_v37 = vmul.f32 %v927_v36, %v1935_v14 }
 0x174   : > { %1649 = vtanh.f32 %v928_v37 }
 0x17e   : > { %v1650_v43 = vpop.eup %1649 }
 0x17f   : > { %v930_v45 = vmul.f32 0.5, %v1650_v43 }
 0x181   : > { %v931_v46 = vadd.f32 0.5, %v930_v45 }
 0x183   : > { %v934_v47 = vsel %vm1929_vm2, %v1650_v43, %v931_v46 }
 0x184   : > { %940 = vrot.lane.b32.xlu0 %v934_v47, %s1756_s14 }
 0x188   : > { %935 = vrot.lane.b32.xlu0 %v1927_v9, %s1757_s0 }
 0x1f6   : > { %v941_v48 = vpop.permute.xlu0 %940 }
 0x1f7   : > { %v943_v49 = vmul.f32 %v941_v48, %v934_v47 }
 0x1f9   : > { %945 = vrot.lane.b32.xlu1 %v943_v49, %s1758_s29 }
 0x1fa   : > { %v936_v50 = vpop.permute.xlu0 %935 }
 0x1fb   : > { %1548 = vmatmul.mubr.msk.f32.vlgmr.msra.gmra.mrb[2].mxu0 %vm774_vm4, %v936_v50  ;;  %v938_v51 = vmul.f32 %v936_v50, %v934_v47 }
 0x1fc   : > { %1569 = vmatprep.mubr.msk.f32.mxu0 %vm1754_vm3, %v1755_v16 }
 0x26b   : > { %v946_v52 = vpop.permute.xlu1 %945 }
 0x26c   : > { %v948_v53 = vadd.f32 %v946_v52, %v938_v51 }
 0x26e   : > { %1651 = vtanh.f32 %v948_v53 }
 0x278   : > { %v1652_v60 = vpop.eup %1651 }
 0x279   : > { %951 = vrot.lane.b32.xlu1 %v1652_v60, %s1756_s14 }
 0x2ce   : > { %v1032_v61 = vpop.f32.mrb[2].mxu0 }
 0x2cf   : > { %v1549_v62 = vpop.f32.mrb[3].mxu0 }
 0x2eb   : > { %v952_v63 = vpop.permute.xlu1 %951 }
 0x2ec   : > { %v954_v0 = vmul.f32 %v952_v63, %v934_v47 }
 0x2ee   : > { %1037 = vrot.lane.b32.xlu0 %v954_v0, %s1758_s29 }
 0x2f2   : > { %1123 = vrot.lane.b32.xlu0 %v1927_v9, %s1756_s14 }
 0x360   : > { %v1038_v1 = vpop.permute.xlu0 %1037 }
 0x361   : > { %1144 = vst.msk [vmem:[%s2124_s12] sm:$0xff] %vm774_vm4, %v1038_v1  ;;  %1559 = vmatmul.mubr.msk.f32.vlgmr.msra.gmra.mrb[2].mxu1 %vm774_vm4, %v1038_v1 }
 0x364   : > { %v1124_v17 = vpop.permute.xlu0 %1123 }
 0x434   : > { %v1107_v3 = vpop.f32.mrb[2].mxu1 }
 0x435   : > { %v1108_v4 = vadd.f32 %v1107_v3, %v1032_v61  ;;  %v1560_v5 = vpop.f32.mrb[3].mxu1 }
 0x437   : > { %v1117_v6 = vadd.f32 %v1477_v2, %v1108_v4 }
 0x439   : > { %v1118_v7 = vmul.f32 %v1117_v6, %v1935_v14  ;;  %v1163_v14 = vld [vmem:[%s2121_s9] sm:$0xff] }
 0x43a   : > { %v1597_v22 = vpack.c.bf16 %v1164_v12, %v1163_v14 }
 0x43b   : > { %1653 = vtanh.f32 %v1118_v7 }
 0x43c   : > { %1598 = vmatpush3.bf16.msra.mxu0 %v1597_v22 }
 0x43d   : > { %1599 = vmatprep.subr.bf16.mxu0 %v1753_v15 }
 0x440   : > { %1601 = vmatpush3.bf16.msra.mxu0 %v1600_v24 }
 0x445   : > { %v1654_v8 = vpop.eup %1653 }
 0x446   : > { %v1120_v9 = vmul.f32 0.5, %v1654_v8 }
 0x448   : > { %v1121_v10 = vadd.f32 0.5, %v1120_v9 }
 0x44a   : > { %v1122_v11 = vsel %vm1929_vm2, %v1654_v8, %v1121_v10 }
 0x44b   : > { %1128 = vrot.lane.b32.xlu1 %v1122_v11, %s1756_s14  ;;  %v1126_v18 = vmul.f32 %v1124_v17, %v1122_v11 }
 0x4bd   : > { %v1129_v13 = vpop.permute.xlu1 %1128 }
 0x4be   : > { %v1131_v16 = vmul.f32 %v1129_v13, %v1122_v11 }
 0x4c0   : > { %1133 = vrot.lane.b32.xlu1 %v1131_v16, %s1758_s29 }
 0x532   : > { %v1134_v19 = vpop.permute.xlu1 %1133 }
 0x533   : > { %v1136_v20 = vadd.f32 %v1134_v19, %v1126_v18 }
 0x535   : > { %1655 = vtanh.f32 %v1136_v20 }
 0x53f   : > { %v1656_v25 = vpop.eup %1655 }
 0x540   : > { %1139 = vrot.lane.b32.xlu0 %v1656_v25, %s1756_s14 }
 0x5b2   : > { %v1140_v26 = vpop.permute.xlu0 %1139 }
 0x5b3   : > { %v1142_v27 = vmul.f32 %v1140_v26, %v1122_v11 }
 0x5b5   : > { %1146 = vrot.lane.b32.xlu0 %v1142_v27, %s1756_s14  ;;  %1174 = vrot.lane.b32.xlu1 %v1142_v27, %s1758_s29 }
 0x5b9   : > { %1158 = vrot.lane.b32.xlu0 %v1136_v20, %s1756_s14  ;;  %1152 = vrot.lane.b32.xlu1 %v948_v53, %s1758_s29  ;;  %s1669_s14 = scalar_lea.vmem %s2068_s15, 128  ;;  %s1673_s29 = sshll.u32 %s1759_s25, 4  ;;  %s1674_s29 = int_to_ptr.vmem [resolvable:$false] %s1673_s29 }
 0x5ba   : > { %p1670_p2 = scmp.ne.s32.totalorder %s2068_s15, %s1669_s14  ;;  %s1675_s0 = scalar_lea.vmem %s1674_s29, 256 }
 0x5bb   : > { %p1676_p5 = scmp.lt.s32.totalorder %s2068_s15, %s1674_s29  ;;  %p1677_p6 = scmp.lt.s32.totalorder %s1675_s0, %s1669_s14 }
 0x5bc   : > { %p1671_p3 = pnand %p1670_p2, %p1866_p10 }
 0x5bd   : > { %p1678_p7 = por %p1677_p6, %p1676_p5 }
 0x5be   : > { %p1672_p4 = pneg %p1671_p3 }
 0x5c0   : > { %p1679_p8 = pnand %p1678_p7, %p1672_p4 }
 0x627   : > { %v1147_v28 = vpop.permute.xlu0 %1146  ;;  %v1175_v29 = vpop.permute.xlu1 %1174 }
 0x628   : > { %1150 = vst.msk [vmem:[%s2124_s12] sm:$0xff] %vm1149_vm5, %v1147_v28  ;;  %1570 = vmatmul.mubr.msk.f32.vlgmr.msra.gmra.mrb[4].mxu0 %vm774_vm4, %v1175_v29 }
 0x62b   : > { %v1159_v15 = vpop.permute.xlu0 %1158  ;;  %v1153_v30 = vpop.permute.xlu1 %1152 }
 0x62c   : > { %1156 = vst.msk [vmem:[%s2124_s12] sm:$0xff] %vm1155_vm6, %v1153_v30 }
 0x62d   : > { %1162 = vst.msk [vmem:[%s2124_s12] sm:$0xff] %vm1161_vm7, %v1159_v15 }
 0x6fb   : > { %v1244_v32 = vpop.f32.mrb[4].mxu0 }
 0x6fc   : > { %v1245_v33 = vadd.f32 %v1478_v31, %v1244_v32  ;;  %v1571_v34 = vpop.f32.mrb[5].mxu0 }
 0x6fe   : > { %1248 = vst [vmem:[%s2141_s22] sm:$0xff] %v1245_v33 }
 0x6ff   : > { %1682 = shalt.err (!%p1679_p8)
}
 0x700   : > { %s1683_s20 = scalar_lea.hbm %s2066_s23, 128  ;;  %s1687_s16 = scalar_lea.hbm %s2123_s11, 768 }
 0x701   : > { %p1684_p9 = scmp.ne.s32.totalorder %s2066_s23, %s1683_s20  ;;  %p1688_p0 = scmp.lt.u32.totalorder %s2066_s23, %s2123_s11 }
 0x702   : > { %p1689_p1 = scmp.lt.u32.totalorder %s1687_s16, %s1683_s20  ;;  %p1691_p3 = scmp.lt.u32.totalorder %s1683_s20, %s2066_s23 }
 0x703   : > { %p1685_p12 = pnand %p1684_p9, %p1866_p10 }
 0x704   : > { %p1690_p2 = por %p1689_p1, %p1688_p0 }
 0x705   : > { %p1686_p13 = pneg %p1685_p12 }
 0x706   : > { %p1692_p4 = por %p1691_p3, %p1690_p2 }
 0x708   : > { %p1693_p5 = pnand %p1692_p4, %p1686_p13 }
 0x70a   : > { %1696 = shalt.err (!%p1693_p5)
}
 0x70b   : > { %1602 = dma.vmem_to_hbm [thread:$0]  (%p1866_p10), %s2068_s15, 128, %s2066_s23, %s1250_s30  }
 0x70c PF: > { %s2143_s18 = sld [smem:[#allocation26_spill]]  ;;  %p1608_p6 = scmp.ge.s32.totalorder %s1749_s28, 2 }
 0x70e   : > { %p1605_p7 = pnand %p1608_p6, %p1870_p11 }
 0x712   : > { %s1281_s24 = sand.u32 1, %s2143_s18  }
 0x713   : > { %s1282_s14 = scalar_lea.sflag [#allocation7], %s1281_s24 }
 0x714   : > { %1732 = dma.done.wait (!%p1605_p7), %s1282_s14, 128  }
 0x715   : > { %1734 = vsyncadd (!%p1605_p7), %s1282_s14, 4294967168  ;;  %s2145_s28 = sld [smem:[#allocation28_spill]]  ;;  %s2146_s25 = sld [smem:[#allocation27_spill]] }
 0x716   : > { %s2147_s0 = sld [smem:[#allocation29_spill]]  ;;  %s2148_s26 = smov %s1741_s27 }
 0x71b   : > { %p29_p8 = scmp.ge.s32.totalorder %s2145_s28, 8   ;;  %s2149_s27 = smov %s2146_s25 }
 0x71d   :  { %31 = sbr.rel (!%p29_p8) target bundleno = 18 (0x12), region = 449 }
 0x724   :  { %1287 = vsyncpa [#allocation7], 1 }
 0x725   :  { %1289 = vsyncpa [#allocation7 + $0x1], 1 }
 0x726   :  { %1290 = vsyncmov [#allocation3] }
 0x729   :  { %s1291_s17 = vpop.sfrf %1290 }
 0x72a   :  { %p1484_p10 = scmp.ne.s32.totalorder %s1291_s17, 0 }
 0x72c   :  { %1295 = shalt.err (%p1484_p10)  }
 0x72d   :  { %1297 = vsyncmov [#allocation3 + $0x1] }
 0x730   :  { %s1298_s15 = vpop.sfrf %1297 }
 0x731   :  { %p1485_p11 = scmp.ne.s32.totalorder %s1298_s15, 0 }
 0x733   :  { %1302 = shalt.err (%p1485_p11)  }
 0x734   :  { %1304 = vsyncmov [#allocation3 + $0x2] }
 0x737   :  { %s1305_s23 = vpop.sfrf %1304 }
 0x738   :  { %p1486_p9 = scmp.ne.s32.totalorder %s1305_s23, 0 }
 0x73a   :  { %1309 = shalt.err (%p1486_p9)  }
 0x73b   :  { %1311 = vsyncmov [#allocation3 + $0x3] }
 0x73e   :  { %s1312_s30 = vpop.sfrf %1311 }
 0x73f   :  { %p1487_p12 = scmp.ne.s32.totalorder %s1312_s30, 0 }
 0x741   :  { %1316 = shalt.err (%p1487_p12)  }
 0x742   :  { %1318 = vsyncmov [#allocation3 + $0x4] }
 0x745   :  { %s1319_s28 = vpop.sfrf %1318 }
 0x746   :  { %p1488_p13 = scmp.ne.s32.totalorder %s1319_s28, 0 }
 0x748   :  { %1323 = shalt.err (%p1488_p13)  }
 0x749   :  { %1325 = vsyncmov [#allocation3 + $0x5] }
 0x74c   :  { %s1326_s1 = vpop.sfrf %1325 }
 0x74d   :  { %p1489_p0 = scmp.ne.s32.totalorder %s1326_s1, 0 }
 0x74f   :  { %1330 = shalt.err (%p1489_p0)  }
 0x750   :  { %1332 = vsyncmov [#allocation3 + $0x6] }
 0x753   :  { %s1333_s2 = vpop.sfrf %1332 }
 0x754   :  { %p1490_p1 = scmp.ne.s32.totalorder %s1333_s2, 0 }
 0x756   :  { %1337 = shalt.err (%p1490_p1)  }
 0x757   :  { %1339 = vsyncmov [#allocation3 + $0x7] }
 0x75a   :  { %s1340_s3 = vpop.sfrf %1339 }
 0x75b   :  { %p1491_p2 = scmp.ne.s32.totalorder %s1340_s3, 0 }
 0x75d   :  { %1344 = shalt.err (%p1491_p2)  }

</bundles_post_ra>
